<compile_context>
chip_gen: v7x
topology: tpu7x:2x2x1
jax: 0.10.0
libtpu: 0.0.40
codegen_flags: <defaults>
</compile_context>

<pallas_src>
import jax
import jax.numpy as jnp
from jax.experimental import pallas as pl
from jax.experimental.pallas import tpu as pltpu

# ---------------- model hyper-parameters (small, consistent w/ module) ------
B = 2            # batch
L = 8            # sequence length
INPUT_DIM = 32   # input_dim
HEAD_NUM = 4     # head_num
HEAD_DIM = 8     # head_dim
OUTPUT_DIM = HEAD_NUM * HEAD_DIM   # output_dim (== self-attn output width)
KEY_DIM = 32     # key_dim
DROP = 0.2       # dropout ratio (inference => identity)


# ---------------------------- fused Pallas kernel ----------------------------
def encoder_kernel(x_ref, wqkv_ref, bqkv_ref, wp_ref, bp_ref, qvec_ref, o_ref):
    """Fused encoder: QKV projection -> multi-head softmax self-attention ->
    additive (linear) attention pooling, for the full batch in one invocation.

    x_ref    : (B, L, INPUT_DIM)
    wqkv_ref : (INPUT_DIM, 3*OUTPUT_DIM)   bqkv_ref : (1, 3*OUTPUT_DIM)
    wp_ref   : (OUTPUT_DIM, KEY_DIM)       bp_ref   : (1, KEY_DIM)
    qvec_ref : (KEY_DIM, 1)
    o_ref    : (B, OUTPUT_DIM)
    """
    # --- fused QKV projection: one MXU pass over all B*L rows, 96-wide out ---
    x2 = x_ref[...].reshape(B * L, INPUT_DIM)                        # (16, 32)
    qkv = jnp.dot(x2, wqkv_ref[...],
                  preferred_element_type=jnp.float32) + bqkv_ref[...]  # (16, 96)
    qkv = qkv.reshape(B, L, 3 * OUTPUT_DIM)                          # (2, 8, 96)

    # --- multi-head scaled-dot-product attention (batched over B) -----------
    scale = 1.0 / (HEAD_DIM ** 0.5)
    head_outs = []
    # NOTE: heads stay as a short static loop: the whole 96-wide qkv tile and
    # every 8-wide head slice live inside a single 128-lane vreg, so a
    # transpose-based (B*H)-batched einsum would cost more relayout than the
    # 4 tiny batched matmuls it replaces at this size.
    for h in range(HEAD_NUM):
        q = qkv[:, :, h * HEAD_DIM:(h + 1) * HEAD_DIM]
        k = qkv[:, :, OUTPUT_DIM + h * HEAD_DIM:OUTPUT_DIM + (h + 1) * HEAD_DIM]
        v = qkv[:, :, 2 * OUTPUT_DIM + h * HEAD_DIM:2 * OUTPUT_DIM + (h + 1) * HEAD_DIM]
        s = jnp.einsum('bqd,bkd->bqk', q, k,
                       preferred_element_type=jnp.float32) * scale   # (B, L, L)
        s = s - jnp.max(s, axis=-1, keepdims=True)
        p = jnp.exp(s)
        p = p * pl.reciprocal(jnp.sum(p, axis=-1, keepdims=True), approx=True)
        head_outs.append(jnp.einsum('bqk,bkd->bqd', p, v,
                                    preferred_element_type=jnp.float32))
    h_sa = jnp.concatenate(head_outs, axis=-1)                       # (B, L, 32)

    # dropout(p=DROP) -> identity in eval mode

    # --- additive (linear) attention pooling: proj -> tanh -> query -> softmax
    h2 = h_sa.reshape(B * L, OUTPUT_DIM)                             # (16, 32)
    t = jnp.tanh(jnp.dot(h2, wp_ref[...],
                         preferred_element_type=jnp.float32) + bp_ref[...])  # (16, K)
    sc = jnp.dot(t, qvec_ref[...],
                 preferred_element_type=jnp.float32)                 # (16, 1)
    sc = sc.reshape(B, L, 1)
    sc = sc - jnp.max(sc, axis=1, keepdims=True)
    w = jnp.exp(sc)
    w = w * pl.reciprocal(jnp.sum(w, axis=1, keepdims=True), approx=True)  # (B, L, 1)

    # one lane-contiguous (B, OUTPUT_DIM) store
    o_ref[...] = jnp.sum(w * h_sa, axis=1)                           # (B, 32)


# ------------------------------ wrapper --------------------------------------
def encoder_forward(x, params):
    """dropout (identity) -> SelfAttn -> LinearAttn, fused into one kernel."""
    vmem = pl.BlockSpec(memory_space=pltpu.MemorySpace.VMEM)
    return pl.pallas_call(
        encoder_kernel,
        out_shape=jax.ShapeDtypeStruct((B, OUTPUT_DIM), jnp.float32),
        in_specs=[vmem] * 6,
        out_specs=vmem,
    )(x, params["wqkv"], params["bqkv"],
      params["wp"], params["bp"], params["qvec"])


# ------------------------ deterministic param init ---------------------------
def init_params(key):
    ks = jax.random.split(key, 9)
    f = jnp.float32
    s = 0.05
    wq = s * jax.random.normal(ks[0], (INPUT_DIM, OUTPUT_DIM), f)
    bq = s * jax.random.normal(ks[1], (1, OUTPUT_DIM), f)
    wk = s * jax.random.normal(ks[2], (INPUT_DIM, OUTPUT_DIM), f)
    bk = s * jax.random.normal(ks[3], (1, OUTPUT_DIM), f)
    wv = s * jax.random.normal(ks[4], (INPUT_DIM, OUTPUT_DIM), f)
    bv = s * jax.random.normal(ks[5], (1, OUTPUT_DIM), f)
    params = {
        # kept separately for the pure-JAX reference
        "wq": wq, "bq": bq, "wk": wk, "bk": bk, "wv": wv, "bv": bv,
        # fused QKV weights fed to the kernel (one matmul instead of three)
        "wqkv": jnp.concatenate([wq, wk, wv], axis=1),        # (32, 96)
        "bqkv": jnp.concatenate([bq, bk, bv], axis=1),        # (1, 96)
        # LinearAttn (additive attention): proj -> tanh -> query dot -> softmax
        "wp": s * jax.random.normal(ks[6], (OUTPUT_DIM, KEY_DIM), f),
        "bp": s * jax.random.normal(ks[7], (1, KEY_DIM), f),
        "qvec": s * jax.random.normal(ks[8], (KEY_DIM, 1), f),
    }
    return params


# ------------------------ pure-JAX reference (correctness) -------------------
def encoder_reference(x, params):
    q = x @ params["wq"] + params["bq"]
    k = x @ params["wk"] + params["bk"]
    v = x @ params["wv"] + params["bv"]

    def split_heads(z):
        return z.reshape(B, L, HEAD_NUM, HEAD_DIM).transpose(0, 2, 1, 3)

    qh, kh, vh = split_heads(q), split_heads(k), split_heads(v)
    s = jnp.einsum('bhqd,bhkd->bhqk', qh, kh) / jnp.sqrt(HEAD_DIM)
    p = jax.nn.softmax(s, axis=-1)
    h_sa = jnp.einsum('bhqk,bhkd->bhqd', p, vh).transpose(0, 2, 1, 3)
    h_sa = h_sa.reshape(B, L, OUTPUT_DIM)

    t = jnp.tanh(h_sa @ params["wp"] + params["bp"])
    sc = (t @ params["qvec"])[..., 0]                        # (B, L)
    w = jax.nn.softmax(sc, axis=-1)
    return jnp.einsum('bl,bld->bd', w, h_sa)                 # (B, OUTPUT_DIM)


if __name__ == "__main__":
    key = jax.random.PRNGKey(0)
    k_x, k_p = jax.random.split(key)
    x = jax.random.normal(k_x, (B, L, INPUT_DIM), jnp.float32)
    params = init_params(k_p)

    out = encoder_forward(x, params)
    out = jax.block_until_ready(out)

    assert out.shape == (B, OUTPUT_DIM)
    assert jnp.all(jnp.isfinite(out))

    ref = encoder_reference(x, params)
    max_err = float(jnp.max(jnp.abs(out - ref)))
    assert max_err < 1e-2, f"mismatch vs reference: {max_err}"

    print("KERNEL_OK")
</pallas_src>

<mosaic_0001>
module attributes {stable_mosaic.version = 11 : i64} {
  func.func @encoder_kernel(%arg0: memref<2x8x32xf32, #tpu.memory_space<vmem>>, %arg1: memref<32x96xf32, #tpu.memory_space<vmem>>, %arg2: memref<1x96xf32, #tpu.memory_space<vmem>>, %arg3: memref<32x32xf32, #tpu.memory_space<vmem>>, %arg4: memref<1x32xf32, #tpu.memory_space<vmem>>, %arg5: memref<32x1xf32, #tpu.memory_space<vmem>>, %arg6: memref<2x32xf32, #tpu.memory_space<vmem>>) attributes {dimension_semantics = [], scalar_prefetch = 0 : i64, scratch_operands = 0 : i64, tpu.core_type = #tpu.core_type<tc>} {
    %c0 = arith.constant 0 : index
    %c0_0 = arith.constant 0 : index
    %c0_1 = arith.constant 0 : index
    %0 = vector.load %arg0[%c0, %c0_0, %c0_1] : memref<2x8x32xf32, #tpu.memory_space<vmem>>, vector<2x8x32xf32>
    %1 = vector.shape_cast %0 : vector<2x8x32xf32> to vector<16x32xf32>
    %c0_2 = arith.constant 0 : index
    %c0_3 = arith.constant 0 : index
    %2 = vector.load %arg1[%c0_2, %c0_3] : memref<32x96xf32, #tpu.memory_space<vmem>>, vector<32x96xf32>
    %cst = arith.constant dense<0.000000e+00> : vector<16x96xf32>
    %3 = tpu.matmul %1, %2, %cst {dimension_numbers = #tpu.dot_dimension_numbers<[1], [0], [0], [1], [0, 0, 1, 1], [], []>} : vector<16x32xf32>, vector<32x96xf32>, vector<16x96xf32> -> vector<16x96xf32>
    %c0_4 = arith.constant 0 : index
    %c0_5 = arith.constant 0 : index
    %4 = vector.load %arg2[%c0_4, %c0_5] : memref<1x96xf32, #tpu.memory_space<vmem>>, vector<1x96xf32>
    %5 = vector.broadcast %4 : vector<1x96xf32> to vector<16x96xf32>
    %6 = arith.addf %3, %5 : vector<16x96xf32>
    %7 = vector.shape_cast %6 : vector<16x96xf32> to vector<2x8x96xf32>
    %8 = vector.extract_strided_slice %7 {offsets = [0, 0, 0], sizes = [2, 8, 8], strides = [1, 1, 1]} : vector<2x8x96xf32> to vector<2x8x8xf32>
    %9 = vector.extract_strided_slice %7 {offsets = [0, 0, 32], sizes = [2, 8, 8], strides = [1, 1, 1]} : vector<2x8x96xf32> to vector<2x8x8xf32>
    %10 = vector.extract_strided_slice %7 {offsets = [0, 0, 64], sizes = [2, 8, 8], strides = [1, 1, 1]} : vector<2x8x96xf32> to vector<2x8x8xf32>
    "tpu.trace_start"() <{level = 10 : i32, message = "bqd,bkd->bqk"}> : () -> ()
    %cst_6 = arith.constant dense<0.000000e+00> : vector<2x8x8xf32>
    %11 = tpu.matmul %8, %9, %cst_6 {dimension_numbers = #tpu.dot_dimension_numbers<[2], [2], [1], [1], [0, 0, 0, 1, 1, 1], [0], [0]>} : vector<2x8x8xf32>, vector<2x8x8xf32>, vector<2x8x8xf32> -> vector<2x8x8xf32>
    "tpu.trace_stop"() : () -> ()
    %cst_7 = arith.constant 0.353553385 : f32
    %12 = vector.broadcast %cst_7 : f32 to vector<2x8x8xf32>
    %13 = arith.mulf %11, %12 : vector<2x8x8xf32>
    %cst_8 = arith.constant dense<0xFF800000> : vector<2x8xf32>
    %14 = vector.multi_reduction <maximumf>, %13, %cst_8 [2] : vector<2x8x8xf32> to vector<2x8xf32>
    %15 = vector.shape_cast %14 : vector<2x8xf32> to vector<2x8x1xf32>
    %16 = vector.broadcast %15 : vector<2x8x1xf32> to vector<2x8x8xf32>
    %17 = arith.subf %13, %16 : vector<2x8x8xf32>
    %18 = math.exp %17 : vector<2x8x8xf32>
    %cst_9 = arith.constant dense<0.000000e+00> : vector<2x8xf32>
    %19 = vector.multi_reduction <add>, %18, %cst_9 [2] : vector<2x8x8xf32> to vector<2x8xf32>
    %20 = vector.shape_cast %19 : vector<2x8xf32> to vector<2x8x1xf32>
    %21 = tpu.reciprocal %20 {approx = true} : vector<2x8x1xf32> -> vector<2x8x1xf32>
    %22 = vector.broadcast %21 : vector<2x8x1xf32> to vector<2x8x8xf32>
    %23 = arith.mulf %18, %22 : vector<2x8x8xf32>
    "tpu.trace_start"() <{level = 10 : i32, message = "bqk,bkd->bqd"}> : () -> ()
    %cst_10 = arith.constant dense<0.000000e+00> : vector<2x8x8xf32>
    %24 = tpu.matmul %23, %10, %cst_10 {dimension_numbers = #tpu.dot_dimension_numbers<[2], [1], [1], [2], [0, 0, 0, 1, 1, 2], [0], [0]>} : vector<2x8x8xf32>, vector<2x8x8xf32>, vector<2x8x8xf32> -> vector<2x8x8xf32>
    "tpu.trace_stop"() : () -> ()
    %25 = vector.extract_strided_slice %7 {offsets = [0, 0, 8], sizes = [2, 8, 8], strides = [1, 1, 1]} : vector<2x8x96xf32> to vector<2x8x8xf32>
    %26 = vector.extract_strided_slice %7 {offsets = [0, 0, 40], sizes = [2, 8, 8], strides = [1, 1, 1]} : vector<2x8x96xf32> to vector<2x8x8xf32>
    %27 = vector.extract_strided_slice %7 {offsets = [0, 0, 72], sizes = [2, 8, 8], strides = [1, 1, 1]} : vector<2x8x96xf32> to vector<2x8x8xf32>
    "tpu.trace_start"() <{level = 10 : i32, message = "bqd,bkd->bqk"}> : () -> ()
    %cst_11 = arith.constant dense<0.000000e+00> : vector<2x8x8xf32>
    %28 = tpu.matmul %25, %26, %cst_11 {dimension_numbers = #tpu.dot_dimension_numbers<[2], [2], [1], [1], [0, 0, 0, 1, 1, 1], [0], [0]>} : vector<2x8x8xf32>, vector<2x8x8xf32>, vector<2x8x8xf32> -> vector<2x8x8xf32>
    "tpu.trace_stop"() : () -> ()
    %cst_12 = arith.constant 0.353553385 : f32
    %29 = vector.broadcast %cst_12 : f32 to vector<2x8x8xf32>
    %30 = arith.mulf %28, %29 : vector<2x8x8xf32>
    %cst_13 = arith.constant dense<0xFF800000> : vector<2x8xf32>
    %31 = vector.multi_reduction <maximumf>, %30, %cst_13 [2] : vector<2x8x8xf32> to vector<2x8xf32>
    %32 = vector.shape_cast %31 : vector<2x8xf32> to vector<2x8x1xf32>
    %33 = vector.broadcast %32 : vector<2x8x1xf32> to vector<2x8x8xf32>
    %34 = arith.subf %30, %33 : vector<2x8x8xf32>
    %35 = math.exp %34 : vector<2x8x8xf32>
    %cst_14 = arith.constant dense<0.000000e+00> : vector<2x8xf32>
    %36 = vector.multi_reduction <add>, %35, %cst_14 [2] : vector<2x8x8xf32> to vector<2x8xf32>
    %37 = vector.shape_cast %36 : vector<2x8xf32> to vector<2x8x1xf32>
    %38 = tpu.reciprocal %37 {approx = true} : vector<2x8x1xf32> -> vector<2x8x1xf32>
    %39 = vector.broadcast %38 : vector<2x8x1xf32> to vector<2x8x8xf32>
    %40 = arith.mulf %35, %39 : vector<2x8x8xf32>
    "tpu.trace_start"() <{level = 10 : i32, message = "bqk,bkd->bqd"}> : () -> ()
    %cst_15 = arith.constant dense<0.000000e+00> : vector<2x8x8xf32>
    %41 = tpu.matmul %40, %27, %cst_15 {dimension_numbers = #tpu.dot_dimension_numbers<[2], [1], [1], [2], [0, 0, 0, 1, 1, 2], [0], [0]>} : vector<2x8x8xf32>, vector<2x8x8xf32>, vector<2x8x8xf32> -> vector<2x8x8xf32>
    "tpu.trace_stop"() : () -> ()
    %42 = vector.extract_strided_slice %7 {offsets = [0, 0, 16], sizes = [2, 8, 8], strides = [1, 1, 1]} : vector<2x8x96xf32> to vector<2x8x8xf32>
    %43 = vector.extract_strided_slice %7 {offsets = [0, 0, 48], sizes = [2, 8, 8], strides = [1, 1, 1]} : vector<2x8x96xf32> to vector<2x8x8xf32>
    %44 = vector.extract_strided_slice %7 {offsets = [0, 0, 80], sizes = [2, 8, 8], strides = [1, 1, 1]} : vector<2x8x96xf32> to vector<2x8x8xf32>
    "tpu.trace_start"() <{level = 10 : i32, message = "bqd,bkd->bqk"}> : () -> ()
    %cst_16 = arith.constant dense<0.000000e+00> : vector<2x8x8xf32>
    %45 = tpu.matmul %42, %43, %cst_16 {dimension_numbers = #tpu.dot_dimension_numbers<[2], [2], [1], [1], [0, 0, 0, 1, 1, 1], [0], [0]>} : vector<2x8x8xf32>, vector<2x8x8xf32>, vector<2x8x8xf32> -> vector<2x8x8xf32>
    "tpu.trace_stop"() : () -> ()
    %cst_17 = arith.constant 0.353553385 : f32
    %46 = vector.broadcast %cst_17 : f32 to vector<2x8x8xf32>
    %47 = arith.mulf %45, %46 : vector<2x8x8xf32>
    %cst_18 = arith.constant dense<0xFF800000> : vector<2x8xf32>
    %48 = vector.multi_reduction <maximumf>, %47, %cst_18 [2] : vector<2x8x8xf32> to vector<2x8xf32>
    %49 = vector.shape_cast %48 : vector<2x8xf32> to vector<2x8x1xf32>
    %50 = vector.broadcast %49 : vector<2x8x1xf32> to vector<2x8x8xf32>
    %51 = arith.subf %47, %50 : vector<2x8x8xf32>
    %52 = math.exp %51 : vector<2x8x8xf32>
    %cst_19 = arith.constant dense<0.000000e+00> : vector<2x8xf32>
    %53 = vector.multi_reduction <add>, %52, %cst_19 [2] : vector<2x8x8xf32> to vector<2x8xf32>
    %54 = vector.shape_cast %53 : vector<2x8xf32> to vector<2x8x1xf32>
    %55 = tpu.reciprocal %54 {approx = true} : vector<2x8x1xf32> -> vector<2x8x1xf32>
    %56 = vector.broadcast %55 : vector<2x8x1xf32> to vector<2x8x8xf32>
    %57 = arith.mulf %52, %56 : vector<2x8x8xf32>
    "tpu.trace_start"() <{level = 10 : i32, message = "bqk,bkd->bqd"}> : () -> ()
    %cst_20 = arith.constant dense<0.000000e+00> : vector<2x8x8xf32>
    %58 = tpu.matmul %57, %44, %cst_20 {dimension_numbers = #tpu.dot_dimension_numbers<[2], [1], [1], [2], [0, 0, 0, 1, 1, 2], [0], [0]>} : vector<2x8x8xf32>, vector<2x8x8xf32>, vector<2x8x8xf32> -> vector<2x8x8xf32>
    "tpu.trace_stop"() : () -> ()
    %59 = vector.extract_strided_slice %7 {offsets = [0, 0, 24], sizes = [2, 8, 8], strides = [1, 1, 1]} : vector<2x8x96xf32> to vector<2x8x8xf32>
    %60 = vector.extract_strided_slice %7 {offsets = [0, 0, 56], sizes = [2, 8, 8], strides = [1, 1, 1]} : vector<2x8x96xf32> to vector<2x8x8xf32>
    %61 = vector.extract_strided_slice %7 {offsets = [0, 0, 88], sizes = [2, 8, 8], strides = [1, 1, 1]} : vector<2x8x96xf32> to vector<2x8x8xf32>
    "tpu.trace_start"() <{level = 10 : i32, message = "bqd,bkd->bqk"}> : () -> ()
    %cst_21 = arith.constant dense<0.000000e+00> : vector<2x8x8xf32>
    %62 = tpu.matmul %59, %60, %cst_21 {dimension_numbers = #tpu.dot_dimension_numbers<[2], [2], [1], [1], [0, 0, 0, 1, 1, 1], [0], [0]>} : vector<2x8x8xf32>, vector<2x8x8xf32>, vector<2x8x8xf32> -> vector<2x8x8xf32>
    "tpu.trace_stop"() : () -> ()
    %cst_22 = arith.constant 0.353553385 : f32
    %63 = vector.broadcast %cst_22 : f32 to vector<2x8x8xf32>
    %64 = arith.mulf %62, %63 : vector<2x8x8xf32>
    %cst_23 = arith.constant dense<0xFF800000> : vector<2x8xf32>
    %65 = vector.multi_reduction <maximumf>, %64, %cst_23 [2] : vector<2x8x8xf32> to vector<2x8xf32>
    %66 = vector.shape_cast %65 : vector<2x8xf32> to vector<2x8x1xf32>
    %67 = vector.broadcast %66 : vector<2x8x1xf32> to vector<2x8x8xf32>
    %68 = arith.subf %64, %67 : vector<2x8x8xf32>
    %69 = math.exp %68 : vector<2x8x8xf32>
    %cst_24 = arith.constant dense<0.000000e+00> : vector<2x8xf32>
    %70 = vector.multi_reduction <add>, %69, %cst_24 [2] : vector<2x8x8xf32> to vector<2x8xf32>
    %71 = vector.shape_cast %70 : vector<2x8xf32> to vector<2x8x1xf32>
    %72 = tpu.reciprocal %71 {approx = true} : vector<2x8x1xf32> -> vector<2x8x1xf32>
    %73 = vector.broadcast %72 : vector<2x8x1xf32> to vector<2x8x8xf32>
    %74 = arith.mulf %69, %73 : vector<2x8x8xf32>
    "tpu.trace_start"() <{level = 10 : i32, message = "bqk,bkd->bqd"}> : () -> ()
    %cst_25 = arith.constant dense<0.000000e+00> : vector<2x8x8xf32>
    %75 = tpu.matmul %74, %61, %cst_25 {dimension_numbers = #tpu.dot_dimension_numbers<[2], [1], [1], [2], [0, 0, 0, 1, 1, 2], [0], [0]>} : vector<2x8x8xf32>, vector<2x8x8xf32>, vector<2x8x8xf32> -> vector<2x8x8xf32>
    "tpu.trace_stop"() : () -> ()
    %76 = tpu.concatenate %24, %41, %58, %75 in 2 : vector<2x8x8xf32>, vector<2x8x8xf32>, vector<2x8x8xf32>, vector<2x8x8xf32> -> vector<2x8x32xf32>
    %77 = vector.shape_cast %76 : vector<2x8x32xf32> to vector<16x32xf32>
    %c0_26 = arith.constant 0 : index
    %c0_27 = arith.constant 0 : index
    %78 = vector.load %arg3[%c0_26, %c0_27] : memref<32x32xf32, #tpu.memory_space<vmem>>, vector<32x32xf32>
    %cst_28 = arith.constant dense<0.000000e+00> : vector<16x32xf32>
    %79 = tpu.matmul %77, %78, %cst_28 {dimension_numbers = #tpu.dot_dimension_numbers<[1], [0], [0], [1], [0, 0, 1, 1], [], []>} : vector<16x32xf32>, vector<32x32xf32>, vector<16x32xf32> -> vector<16x32xf32>
    %c0_29 = arith.constant 0 : index
    %c0_30 = arith.constant 0 : index
    %80 = vector.load %arg4[%c0_29, %c0_30] : memref<1x32xf32, #tpu.memory_space<vmem>>, vector<1x32xf32>
    %81 = vector.broadcast %80 : vector<1x32xf32> to vector<16x32xf32>
    %82 = arith.addf %79, %81 : vector<16x32xf32>
    %83 = math.tanh %82 : vector<16x32xf32>
    %c0_31 = arith.constant 0 : index
    %c0_32 = arith.constant 0 : index
    %84 = vector.load %arg5[%c0_31, %c0_32] : memref<32x1xf32, #tpu.memory_space<vmem>>, vector<32x1xf32>
    %cst_33 = arith.constant dense<0.000000e+00> : vector<16x1xf32>
    %85 = tpu.matmul %83, %84, %cst_33 {dimension_numbers = #tpu.dot_dimension_numbers<[1], [0], [0], [1], [0, 0, 1, 1], [], []>} : vector<16x32xf32>, vector<32x1xf32>, vector<16x1xf32> -> vector<16x1xf32>
    %86 = vector.shape_cast %85 : vector<16x1xf32> to vector<2x8x1xf32>
    %cst_34 = arith.constant dense<0xFF800000> : vector<2x1xf32>
    %87 = vector.multi_reduction <maximumf>, %86, %cst_34 [1] : vector<2x8x1xf32> to vector<2x1xf32>
    %88 = vector.shape_cast %87 : vector<2x1xf32> to vector<2x1x1xf32>
    %89 = vector.broadcast %88 : vector<2x1x1xf32> to vector<2x8x1xf32>
    %90 = arith.subf %86, %89 : vector<2x8x1xf32>
    %91 = math.exp %90 : vector<2x8x1xf32>
    %cst_35 = arith.constant dense<0.000000e+00> : vector<2x1xf32>
    %92 = vector.multi_reduction <add>, %91, %cst_35 [1] : vector<2x8x1xf32> to vector<2x1xf32>
    %93 = vector.shape_cast %92 : vector<2x1xf32> to vector<2x1x1xf32>
    %94 = tpu.reciprocal %93 {approx = true} : vector<2x1x1xf32> -> vector<2x1x1xf32>
    %95 = vector.broadcast %94 : vector<2x1x1xf32> to vector<2x8x1xf32>
    %96 = arith.mulf %91, %95 : vector<2x8x1xf32>
    %97 = vector.broadcast %96 : vector<2x8x1xf32> to vector<2x8x32xf32>
    %98 = arith.mulf %97, %76 : vector<2x8x32xf32>
    %cst_36 = arith.constant dense<0.000000e+00> : vector<2x32xf32>
    %99 = vector.multi_reduction <add>, %98, %cst_36 [1] : vector<2x8x32xf32> to vector<2x32xf32>
    %c0_37 = arith.constant 0 : index
    %c0_38 = arith.constant 0 : index
    %100 = vector.load %arg6[%c0_37, %c0_38] : memref<2x32xf32, #tpu.memory_space<vmem>>, vector<2x32xf32>
    tpu.vector_store %arg6[%c0_37, %c0_38], %99 {strides = array<i32>} : memref<2x32xf32, #tpu.memory_space<vmem>>, vector<2x32xf32>,
    return
  }
}

</mosaic_0001>

<bundles_post_ra>
// kernel: tpu_custom_call.1
= control target key start
LH: loop header
LB: loop body
LE: loop exit
PB: predicated region body
PF: predicated region fallthrough
CT: control target
= control target key end

     0   :  { %11 = vsyncpa [#allocation3], 0  ;;  %s2407_s0 = inlined_call_operand.hbm [shape: f32[2,8,32], index: 0, kind: input, shape index: {}]   ;;  %s2408_s1 = inlined_call_operand.vmem [shape: f32[32,96], index: 1, kind: input, shape index: {}]   ;;  %s2409_s2 = inlined_call_operand.vmem [shape: f32[1,96], index: 2, kind: input, shape index: {}]   ;;  %s2410_s3 = inlined_call_operand.hbm [shape: f32[32,32], index: 3, kind: input, shape index: {}]   ;;  %s2411_s4 = inlined_call_operand.vmem [shape: f32[1,32], index: 4, kind: input, shape index: {}]   ;;  %s2412_s5 = inlined_call_operand.vmem [shape: f32[32,1], index: 5, kind: input, shape index: {}]   ;;  %s2413_s6 = inlined_call_operand.hbm [shape: f32[2,32], index: 6, kind: output, shape index: {}]  }
   0x1   :  { %12 = vsyncpa [#allocation6], 0 }
   0x2   :  { %13 = vsyncpa [#allocation4], 0  ;;  %s2131_s21 = smov [#allocation2]   ;;  %s2059_s25 = scalar_lea.hbm %s2407_s0, 256 }
   0x3   :  { %s19_s22 = sshll.u32 %s2131_s21, 4  ;;  %p2060_p0 = scmp.ne.s32.totalorder %s2407_s0, %s2059_s25  ;;  %s20_s22 = int_to_ptr.vmem [resolvable:$true] %s19_s22 }
   0x4   :  { %p2063_p1 = scmp.lt.u32.totalorder %s2059_s25, %s2407_s0 }
   0x6   :  { %p2065_p2 = pnand %p2063_p1, %p2060_p0 }
   0x8   :  { %2068 = shalt.err (!%p2065_p2)
}
   0x9   :  { %s2069_s30 = scalar_lea.vmem %s20_s22, 256  ;;  %p2074_p4 = scmp.lt.s32.totalorder %s20_s22, %s20_s22 }
   0xa   :  { %p2070_p3 = scmp.ne.s32.totalorder %s20_s22, %s2069_s30  ;;  %p2075_p5 = scmp.lt.s32.totalorder %s2069_s30, %s2069_s30 }
   0xc   :  { %p2076_p6 = por %p2075_p5, %p2074_p4 }
   0xe   :  { %p2077_p7 = pnand %p2076_p6, %p2070_p3 }
  0x10   :  { %2080 = shalt.err (!%p2077_p7)
}
  0x11   :  { %s2132_s7 = smov 128   ;;  %s2133_s8 = smov 8  }
  0x12   :  { %25 = dma.hbm_to_vmem [thread:$0]  %s2407_s0, 256, %s20_s22, [#allocation3], %s2132_s7, %s2132_s7, %s2133_s8  }
  0x13   :  { %s2134_s11 = smov [#allocation5]   ;;  %s2081_s15 = scalar_lea.hbm %s2410_s3, 512 }
  0x14   :  { %s35_s12 = sshll.u32 %s2134_s11, 4  ;;  %p2082_p8 = scmp.ne.s32.totalorder %s2410_s3, %s2081_s15  ;;  %s36_s12 = int_to_ptr.vmem [resolvable:$true] %s35_s12 }
  0x15   :  { %p2085_p9 = scmp.lt.u32.totalorder %s2081_s15, %s2410_s3 }
  0x17   :  { %p2087_p10 = pnand %p2085_p9, %p2082_p8 }
  0x19   :  { %2090 = shalt.err (!%p2087_p10)
}
  0x1a   :  { %s2091_s20 = scalar_lea.vmem %s36_s12, 512  ;;  %p2096_p12 = scmp.lt.s32.totalorder %s36_s12, %s36_s12 }
  0x1b   :  { %p2092_p11 = scmp.ne.s32.totalorder %s36_s12, %s2091_s20  ;;  %p2097_p13 = scmp.lt.s32.totalorder %s2091_s20, %s2091_s20 }
  0x1d   :  { %p2098_p0 = por %p2097_p13, %p2096_p12 }
  0x1f   :  { %p2099_p1 = pnand %p2098_p0, %p2092_p11 }
  0x21   :  { %2102 = shalt.err (!%p2099_p1)
}
  0x22   :  { %41 = dma.hbm_to_vmem [thread:$0]  %s2410_s3, 512, %s36_s12, [#allocation6], %s2132_s7, %s2132_s7, %s2133_s8  }
  0x23   :  { %2125 = dma.done.wait [#allocation3], 256  }
  0x24   :  { %2126 = vsyncadd [#allocation3], 4294967040 }
  0x25   :  { %2127 = dma.done.wait [#allocation6], 512  }
  0x26   :  { %2128 = vsyncadd [#allocation6], 4294966784  ;;  %vm65_vm0 = vcmask 261120   ;;  %v54_v0 = vld [vmem:[%s2408_s1] sm:$0xff]  ;;  %v55_v1 = vld [vmem:[%s2408_s1 + $0x8] sm:$0xff]  ;;  %v2135_v8 = vmov 0.0  }
  0x27   :  { %v56_v2 = vld [vmem:[%s2408_s1 + $0x10] sm:$0xff]  ;;  %v1968_v3 = vpack.c.bf16 %v55_v1, %v54_v0  ;;  %v57_v4 = vld [vmem:[%s2408_s1 + $0x18] sm:$0xff]  ;;  %v52_v5 = vld [vmem:[#allocation2] sm:$0xff]  ;;  %1866 = vmatprep.subr.mxu1 %v2135_v8  ;;  %vm2136_vm1 = vmmov 0   ;;  %s2137_s30 = smov 96   ;;  %vm150_vm2 = vcmask 64512  }
  0x28   :  { %v1972_v6 = vpack.c.bf16 %v57_v4, %v56_v2  ;;  %1863 = vmatprep.mubr.msk.f32.mxu0 %vm65_vm0, %v52_v5  ;;  %v53_v7 = vld [vmem:[#allocation2 + $0x8] sm:$0xff]  ;;  %1868 = vmatprep.mubr.msk.f32.mxu1 %vm2136_vm1, %v2135_v8  ;;  %v1773_v9 = vld [vmem:[%s2409_s2] ss:$0 sm:$0xff]  ;;  %s2138_s2 = smov 64   ;;  %s2139_s7 = smov 88   ;;  %vm1503_vm3 = vcmask 195584  }
  0x29   :  { %1969 = vmatprep.subr.bf16.mxu0 %v1968_v3  ;;  %s2140_s9 = smov 120   ;;  %s2141_s10 = smov 56   ;;  %vm1500_vm4 = vcmask 130048   ;;  %vm1685_vm5 = vcmask 7168   ;;  %vm1752_vm6 = vcmask 1041409   ;;  %vm1755_vm7 = vcmask 254976  }
  0x2a   :  { %1971 = vmatpush3.bf16.msra.mxu0 %v1968_v3  ;;  %s2142_s11 = smov 80   ;;  %s2143_s12 = smov 112  }
  0x2b   :  { %1973 = vmatprep.subr.bf16.mxu0 %v1972_v6  ;;  %s2144_s13 = smov 48   ;;  %s2145_s14 = smov 72  }
  0x2c   :  { %s2146_s15 = smov 104   ;;  %s2147_s16 = smov 40  }
  0x2d   :  { %s2148_s17 = smov 16  }
  0x2e   :  { %1975 = vmatpush3.bf16.msra.mxu0 %v1972_v6 }
  0x2f   :  { %1876 = vmatprep.subr.mxu0 %v2135_v8 }
  0x31   :  { %1864 = vmatmul.mubr.msk.f32.vlgmr.msra.gmra.mrb[0].mxu0 %vm65_vm0, %v53_v7 }
  0x32   :  { %1878 = vmatprep.mubr.msk.f32.mxu0 %vm2136_vm1, %v2135_v8 }
 0x104   :  { %v1865_v10 = vpop.f32.mrb[0].mxu0 }
 0x105   :  { %v138_v11 = vpop.f32.mrb[1].mxu0  ;;  %v2239_v13 = vadd.f32 %v1865_v10, %v1773_v9 }
 0x106   :  { %v2236_v12 = vadd.f32 %v1773_v9, %v138_v11 }
 0x108   :  { %148 = vrot.lane.b32.xlu0 %v2236_v12, %s2137_s30 }
 0x10c   :  { %226 = vrot.lane.b32.xlu0 %v2239_v13, %s2137_s30 }
 0x17a   :  { %v149_v14 = vpop.permute.xlu0 %148 }
 0x17b   :  { %1867 = vmatpush3.xpose.msk.msra.mxu1 %vm150_vm2, %v149_v14 }
 0x17c   :  { %1871 = vmatprep.subr.mxu1 %v2135_v8 }
 0x17e   :  { %1869 = vmatmul.mubr.msk.f32.vlgmr.msra.gmra.mrb[0].mxu1 %vm150_vm2, %v2236_v12  ;;  %v227_v15 = vpop.permute.xlu0 %226 }
 0x17f   :  { %1872 = vmatpush3.xpose.msk.msra.mxu1 %vm150_vm2, %v227_v15  ;;  %1873 = vmatprep.mubr.msk.f32.mxu1 %vm2136_vm1, %v2135_v8 }
 0x180   :  { %1881 = vmatprep.subr.mxu1 %v2135_v8 }
 0x182   :  { %1874 = vmatmul.mubr.msk.f32.vlgmr.msra.gmra.mrb[2].mxu1 %vm150_vm2, %v2239_v13 }
 0x183   :  { %1883 = vmatprep.mubr.msk.f32.mxu1 %vm2136_vm1, %v2135_v8 }
 0x251   :  { %v221_v16 = vpop.f32.mrb[0].mxu1 }
 0x252   :  { %v302_v17 = vmul.f32 0.35355338, %v221_v16  ;;  %v1870_v18 = vpop.f32.mrb[1].mxu1 }
 0x254   :  { %v304_v19 = vsel %vm150_vm2, %v302_v17, -inf }
 0x255   :  { %305 = vmax.xlane.f32.xlu1 %v304_v19  ;;  %v298_v20 = vpop.f32.mrb[2].mxu1 }
 0x256   :  { %v303_v21 = vmul.f32 0.35355338, %v298_v20  ;;  %v1875_v22 = vpop.f32.mrb[3].mxu1 }
 0x258   :  { %v307_v23 = vsel %vm150_vm2, %v303_v21, -inf }
 0x259   :  { %308 = vmax.xlane.f32.xlu1 %v307_v23 }
 0x26a   :  { %326 = vrot.lane.b32.xlu1 %v2236_v12, %s2138_s2 }
 0x26e   :  { %402 = vrot.lane.b32.xlu1 %v2239_v13, %s2138_s2 }
 0x272   :  { %480 = vrot.lane.b32.xlu1 %v2236_v12, %s2139_s7 }
 0x276   :  { %558 = vrot.lane.b32.xlu1 %v2239_v13, %s2139_s7 }
 0x2e2   :  { %v306_v24 = vpop.xlane.xlu1 %305 }
 0x2e3   :  { %v310_v25 = vsub.f32 %v302_v17, %v306_v24 }
 0x2e5   :  { %v312_v26 = vmul.f32 1.442695, %v310_v25 }
 0x2e6   :  { %v309_v27 = vpop.xlane.xlu1 %308 }
 0x2e7   :  { %2015 = vpow2.f32 %v312_v26  ;;  %v311_v28 = vsub.f32 %v303_v21, %v309_v27 }
 0x2e9   :  { %v314_v29 = vmul.f32 1.442695, %v311_v28 }
 0x2ea   :  { %v327_v30 = vpop.permute.xlu1 %326 }
 0x2eb   :  { %2017 = vpow2.f32 %v314_v29  ;;  %1877 = vmatpush3.msra.mxu0 %v327_v30 }
 0x2ec   :  { %1886 = vmatprep.subr.mxu0 %v2135_v8 }
 0x2ee   :  { %v403_v31 = vpop.permute.xlu1 %402 }
 0x2ef   :  { %1882 = vmatpush3.msra.mxu1 %v403_v31 }
 0x2f0   :  { %1891 = vmatprep.subr.mxu1 %v2135_v8 }
 0x2f1   :  { %v2016_v32 = vpop.eup %2015 }
 0x2f2   :  { %v316_v33 = vsel %vm150_vm2, %v2016_v32, 0.0  ;;  %v481_v36 = vpop.permute.xlu1 %480 }
 0x2f3   :  { %317 = vadd.xlane.f32.xlu0 %v316_v33 }
 0x2f5   :  { %v2018_v34 = vpop.eup %2017 }
 0x2f6   :  { %v319_v35 = vsel %vm150_vm2, %v2018_v34, 0.0  ;;  %v559_v37 = vpop.permute.xlu1 %558 }
 0x2f7   :  { %320 = vadd.xlane.f32.xlu1 %v319_v35 }
 0x308   :  { %556 = vrot.lane.b32.xlu1 %v2239_v13, %s2140_s9 }
 0x309   :  { %478 = vrot.lane.b32.xlu0 %v2236_v12, %s2140_s9 }
 0x380   :  { %v318_v38 = vpop.xlane.xlu0 %317 }
 0x381   :  { %2019 = vrcp.f32 %v318_v38 }
 0x384   :  { %v321_v39 = vpop.xlane.xlu1 %320  ;;  %v479_v44 = vpop.permute.xlu0 %478 }
 0x385   :  { %2021 = vrcp.f32 %v321_v39 }
 0x388   :  { %v557_v45 = vpop.permute.xlu1 %556 }
 0x38b   :  { %v2020_v40 = vpop.eup %2019 }
 0x38c   :  { %v324_v41 = vmul.f32 %v2020_v40, %v2016_v32 }
 0x38e   :  { %1879 = vmatmul.mubr.msk.f32.vlgmr.msra.gmra.mrb[2].mxu0 %vm150_vm2, %v324_v41 }
 0x38f   :  { %v2022_v42 = vpop.eup %2021  ;;  %1887 = vmatpush3.xpose.msk.msra.mxu0 %vm150_vm2, %v481_v36  ;;  %1888 = vmatprep.mubr.msk.f32.mxu0 %vm2136_vm1, %v2135_v8 }
 0x390   :  { %v325_v43 = vmul.f32 %v2022_v42, %v2018_v34  ;;  %1896 = vmatprep.subr.mxu0 %v2135_v8 }
 0x392   :  { %1884 = vmatmul.mubr.msk.f32.vlgmr.msra.gmra.mrb[4].mxu1 %vm150_vm2, %v325_v43  ;;  %1889 = vmatmul.mubr.msk.f32.vlgmr.msra.gmra.mrb[4].mxu0 %vm150_vm2, %v479_v44 }
 0x393   :  { %1892 = vmatpush3.xpose.msk.msra.mxu1 %vm150_vm2, %v559_v37  ;;  %1893 = vmatprep.mubr.msk.f32.mxu1 %vm2136_vm1, %v2135_v8 }
 0x394   :  { %1901 = vmatprep.subr.mxu1 %v2135_v8  ;;  %1898 = vmatprep.mubr.msk.f32.mxu0 %vm2136_vm1, %v2135_v8 }
 0x396   :  { %1894 = vmatmul.mubr.msk.f32.vlgmr.msra.gmra.mrb[6].mxu1 %vm150_vm2, %v557_v45 }
 0x397   :  { %1903 = vmatprep.mubr.msk.f32.mxu1 %vm2136_vm1, %v2135_v8 }
 0x461   :  { %v2282_v46 = vpop.f32.mrb[2].mxu0 }
 0x462   :  { %v1880_v47 = vpop.f32.mrb[3].mxu0 }
 0x465   :  { %v2284_v48 = vpop.f32.mrb[4].mxu1  ;;  %v552_v49 = vpop.f32.mrb[4].mxu0 }
 0x466   :  { %v634_v50 = vmul.f32 0.35355338, %v552_v49  ;;  %v1885_v51 = vpop.f32.mrb[5].mxu1  ;;  %v1890_v52 = vpop.f32.mrb[5].mxu0 }
 0x468   :  { %v636_v53 = vsel %vm150_vm2, %v634_v50, -inf }
 0x469   :  { %v630_v54 = vpop.f32.mrb[6].mxu1  ;;  %637 = vmax.xlane.f32.xlu1 %v636_v53 }
 0x46a   :  { %v635_v55 = vmul.f32 0.35355338, %v630_v54  ;;  %v1895_v56 = vpop.f32.mrb[7].mxu1 }
 0x46c   :  { %v639_v57 = vsel %vm150_vm2, %v635_v55, -inf }
 0x46d   :  { %640 = vmax.xlane.f32.xlu0 %v639_v57 }
 0x47a   :  { %658 = vrot.lane.b32.xlu1 %v2236_v12, %s2141_s10 }
 0x47e   :  { %812 = vrot.lane.b32.xlu1 %v2236_v12, %s2142_s11 }
 0x482   :  { %890 = vrot.lane.b32.xlu1 %v2239_v13, %s2142_s11 }
 0x483   :  { %734 = vrot.lane.b32.xlu0 %v2239_v13, %s2141_s10 }
 0x487   :  { %810 = vrot.lane.b32.xlu0 %v2236_v12, %s2143_s12 }
 0x4f6   :  { %v638_v58 = vpop.xlane.xlu1 %637 }
 0x4f7   :  { %v642_v59 = vsub.f32 %v634_v50, %v638_v58 }
 0x4f9   :  { %v644_v60 = vmul.f32 1.442695, %v642_v59 }
 0x4fa   :  { %v659_v61 = vpop.permute.xlu1 %658  ;;  %v641_v62 = vpop.xlane.xlu0 %640 }
 0x4fb   :  { %2023 = vpow2.f32 %v644_v60  ;;  %v643_v63 = vsub.f32 %v635_v55, %v641_v62  ;;  %1897 = vmatpush3.msra.mxu0 %v659_v61 }
 0x4fc   :  { %1906 = vmatprep.subr.mxu0 %v2135_v8 }
 0x4fd   :  { %v646_v0 = vmul.f32 1.442695, %v643_v63 }
 0x4fe   :  { %v735_v1 = vpop.permute.xlu0 %734  ;;  %v813_v6 = vpop.permute.xlu1 %812 }
 0x4ff   :  { %2025 = vpow2.f32 %v646_v0  ;;  %1902 = vmatpush3.msra.mxu1 %v735_v1 }
 0x500   :  { %1911 = vmatprep.subr.mxu1 %v2135_v8 }
 0x502   :  { %v891_v7 = vpop.permute.xlu1 %890  ;;  %v811_v17 = vpop.permute.xlu0 %810 }
 0x505   :  { %v2024_v2 = vpop.eup %2023 }
 0x506   :  { %v648_v3 = vsel %vm150_vm2, %v2024_v2, 0.0 }
 0x507   :  { %649 = vadd.xlane.f32.xlu1 %v648_v3 }
 0x509   :  { %v2026_v4 = vpop.eup %2025 }
 0x50a   :  { %v651_v5 = vsel %vm150_vm2, %v2026_v4, 0.0 }
 0x50b   :  { %652 = vadd.xlane.f32.xlu1 %v651_v5 }
 0x51c   :  { %888 = vrot.lane.b32.xlu1 %v2239_v13, %s2143_s12 }
 0x594   :  { %v650_v9 = vpop.xlane.xlu1 %649 }
 0x595   :  { %2027 = vrcp.f32 %v650_v9 }
 0x598   :  { %v653_v10 = vpop.xlane.xlu1 %652 }
 0x599   :  { %2029 = vrcp.f32 %v653_v10 }
 0x59c   :  { %v889_v18 = vpop.permute.xlu1 %888 }
 0x59f   :  { %v2028_v11 = vpop.eup %2027 }
 0x5a0   :  { %v656_v14 = vmul.f32 %v2028_v11, %v2024_v2 }
 0x5a2   :  { %1899 = vmatmul.mubr.msk.f32.vlgmr.msra.gmra.mrb[6].mxu0 %vm150_vm2, %v656_v14 }
 0x5a3   :  { %v2030_v15 = vpop.eup %2029  ;;  %1907 = vmatpush3.xpose.msk.msra.mxu0 %vm150_vm2, %v813_v6  ;;  %1908 = vmatprep.mubr.msk.f32.mxu0 %vm2136_vm1, %v2135_v8 }
 0x5a4   :  { %v657_v16 = vmul.f32 %v2030_v15, %v2026_v4  ;;  %1916 = vmatprep.subr.mxu0 %v2135_v8 }
 0x5a6   :  { %1904 = vmatmul.mubr.msk.f32.vlgmr.msra.gmra.mrb[8].mxu1 %vm150_vm2, %v657_v16  ;;  %1909 = vmatmul.mubr.msk.f32.vlgmr.msra.gmra.mrb[8].mxu0 %vm150_vm2, %v811_v17 }
 0x5a7   :  { %1912 = vmatpush3.xpose.msk.msra.mxu1 %vm150_vm2, %v891_v7  ;;  %1913 = vmatprep.mubr.msk.f32.mxu1 %vm2136_vm1, %v2135_v8 }
 0x5a8   :  { %1921 = vmatprep.subr.mxu1 %v2135_v8  ;;  %1918 = vmatprep.mubr.msk.f32.mxu0 %vm2136_vm1, %v2135_v8 }
 0x5aa   :  { %1914 = vmatmul.mubr.msk.f32.vlgmr.msra.gmra.mrb[10].mxu1 %vm150_vm2, %v889_v18 }
 0x5ab   :  { %1923 = vmatprep.mubr.msk.f32.mxu1 %vm2136_vm1, %v2135_v8 }
 0x675   :  { %v2314_v19 = vpop.f32.mrb[6].mxu0 }
 0x676   :  { %v1900_v20 = vpop.f32.mrb[7].mxu0 }
 0x679   :  { %v2316_v21 = vpop.f32.mrb[8].mxu1  ;;  %v884_v22 = vpop.f32.mrb[8].mxu0 }
 0x67a   :  { %v966_v23 = vmul.f32 0.35355338, %v884_v22  ;;  %v1905_v24 = vpop.f32.mrb[9].mxu1  ;;  %v1910_v25 = vpop.f32.mrb[9].mxu0  ;;  %v1506_v22 = vld [vmem:[#allocation5] sm:$0xff] }
 0x67b   :  { %v1509_v25 = vld [vmem:[#allocation5 + $0x18] sm:$0xff] }
 0x67c   :  { %v968_v26 = vsel %vm150_vm2, %v966_v23, -inf }
 0x67d   :  { %v962_v27 = vpop.f32.mrb[10].mxu1  ;;  %969 = vmax.xlane.f32.xlu0 %v968_v26 }
 0x67e   :  { %v967_v28 = vmul.f32 0.35355338, %v962_v27  ;;  %v1915_v29 = vpop.f32.mrb[11].mxu1 }
 0x680   :  { %v971_v30 = vsel %vm150_vm2, %v967_v28, -inf }
 0x681   :  { %972 = vmax.xlane.f32.xlu1 %v971_v30 }
 0x692   :  { %990 = vrot.lane.b32.xlu1 %v2236_v12, %s2144_s13 }
 0x693   :  { %1066 = vrot.lane.b32.xlu0 %v2239_v13, %s2144_s13 }
 0x696   :  { %1144 = vrot.lane.b32.xlu1 %v2236_v12, %s2145_s14 }
 0x69a   :  { %1222 = vrot.lane.b32.xlu1 %v2239_v13, %s2145_s14 }
 0x69e   :  { %1220 = vrot.lane.b32.xlu1 %v2239_v13, %s2146_s15 }
 0x70a   :  { %v970_v31 = vpop.xlane.xlu0 %969 }
 0x70b   :  { %v974_v32 = vsub.f32 %v966_v23, %v970_v31  ;;  %v1507_v23 = vld [vmem:[#allocation5 + $0x8] sm:$0xff] }
 0x70c   :  { %v1976_v24 = vpack.c.bf16 %v1507_v23, %v1506_v22 }
 0x70d   :  { %v976_v33 = vmul.f32 1.442695, %v974_v32 }
 0x70e   :  { %v973_v34 = vpop.xlane.xlu1 %972  ;;  %v1067_v35 = vpop.permute.xlu0 %1066 }
 0x70f   :  { %2031 = vpow2.f32 %v976_v33  ;;  %v975_v36 = vsub.f32 %v967_v28, %v973_v34  ;;  %1922 = vmatpush3.msra.mxu1 %v1067_v35 }
 0x710   :  { %1931 = vmatprep.subr.mxu1 %v2135_v8 }
 0x711   :  { %v978_v37 = vmul.f32 1.442695, %v975_v36 }
 0x712   :  { %v991_v38 = vpop.permute.xlu1 %990 }
 0x713   :  { %2033 = vpow2.f32 %v978_v37  ;;  %1917 = vmatpush3.msra.mxu0 %v991_v38 }
 0x714   :  { %1926 = vmatprep.subr.mxu0 %v2135_v8 }
 0x716   :  { %v1145_v45 = vpop.permute.xlu1 %1144 }
 0x719   :  { %v2032_v39 = vpop.eup %2031 }
 0x71a   :  { %v980_v40 = vsel %vm150_vm2, %v2032_v39, 0.0  ;;  %v1223_v51 = vpop.permute.xlu1 %1222 }
 0x71b   :  { %981 = vadd.xlane.f32.xlu0 %v980_v40 }
 0x71d   :  { %v2034_v41 = vpop.eup %2033 }
 0x71e   :  { %v983_v42 = vsel %vm150_vm2, %v2034_v41, 0.0  ;;  %v1221_v54 = vpop.permute.xlu1 %1220 }
 0x71f   :  { %984 = vadd.xlane.f32.xlu0 %v983_v42 }
 0x735   :  { %1142 = vrot.lane.b32.xlu0 %v2236_v12, %s2146_s15 }
 0x7a8   :  { %v982_v43 = vpop.xlane.xlu0 %981 }
 0x7a9   :  { %2035 = vrcp.f32 %v982_v43  ;;  %v1601_v43 = vld [vmem:[%s2412_s5 + $0x8] sm:$0xff] }
 0x7ac   :  { %v985_v44 = vpop.xlane.xlu0 %984 }
 0x7ad   :  { %2037 = vrcp.f32 %v985_v44  ;;  %v1602_v44 = vld [vmem:[%s2412_s5 + $0x10] sm:$0xff] }
 0x7b0   :  { %v1143_v53 = vpop.permute.xlu0 %1142 }
 0x7b3   :  { %v2036_v47 = vpop.eup %2035 }
 0x7b4   :  { %v988_v49 = vmul.f32 %v2036_v47, %v2032_v39 }
 0x7b6   :  { %1919 = vmatmul.mubr.msk.f32.vlgmr.msra.gmra.mrb[10].mxu0 %vm150_vm2, %v988_v49  ;;  %v1800_v49 = vld [vmem:[%s2411_s4] ss:$0 sm:$0xff]  ;;  %s2151_s4 = smov [#allocation7]  }
 0x7b7   :  { %v2038_v50 = vpop.eup %2037  ;;  %1927 = vmatpush3.xpose.msk.msra.mxu0 %vm150_vm2, %v1145_v45  ;;  %1928 = vmatprep.mubr.msk.f32.mxu0 %vm2136_vm1, %v2135_v8  ;;  %v1603_v45 = vld [vmem:[%s2412_s5 + $0x18] sm:$0xff] }
 0x7b8   :  { %v989_v52 = vmul.f32 %v2038_v50, %v2034_v41  ;;  %1936 = vmatprep.subr.mxu0 %v2135_v8  ;;  %v1988_v47 = vpack.c.bf16 %v1603_v45, %v1602_v44 }
 0x7ba   :  { %1924 = vmatmul.mubr.msk.f32.vlgmr.msra.gmra.mrb[12].mxu1 %vm150_vm2, %v989_v52  ;;  %1929 = vmatmul.mubr.msk.f32.vlgmr.msra.gmra.mrb[12].mxu0 %vm150_vm2, %v1143_v53 }
 0x7bb   :  { %1932 = vmatpush3.xpose.msk.msra.mxu1 %vm150_vm2, %v1223_v51  ;;  %1933 = vmatprep.mubr.msk.f32.mxu1 %vm2136_vm1, %v2135_v8 }
 0x7bc   :  { %1941 = vmatprep.subr.mxu1 %v2135_v8  ;;  %1938 = vmatprep.mubr.msk.f32.mxu0 %vm2136_vm1, %v2135_v8 }
 0x7be   :  { %1934 = vmatmul.mubr.msk.f32.vlgmr.msra.gmra.mrb[14].mxu1 %vm150_vm2, %v1221_v54 }
 0x7bf   :  { %1943 = vmatprep.mubr.msk.f32.mxu1 %vm2136_vm1, %v2135_v8 }
 0x889   :  { %v1062_v55 = vpop.f32.mrb[10].mxu0 }
 0x88a   :  { %v1920_v56 = vpop.f32.mrb[11].mxu0 }
 0x88b   :  { %v2150_v56 = vmov 0  }
 0x88c   :  { %2014 = vset.pattern.permute.xlu1 %v2150_v56  ;;  %2013 = vset.pattern.permute.xlu0 %v2150_v56 }
 0x88d   :  { %v1138_v57 = vpop.f32.mrb[12].mxu1  ;;  %v1216_v58 = vpop.f32.mrb[12].mxu0 }
 0x88e   :  { %v1298_v59 = vmul.f32 0.35355338, %v1216_v58  ;;  %v1925_v60 = vpop.f32.mrb[13].mxu1  ;;  %v1930_v61 = vpop.f32.mrb[13].mxu0 }
 0x890   :  { %v1300_v62 = vsel %vm150_vm2, %v1298_v59, -inf }
 0x891   :  { %v1294_v63 = vpop.f32.mrb[14].mxu1  ;;  %1301 = vmax.xlane.f32.xlu0 %v1300_v62 }
 0x892   :  { %v1299_v0 = vmul.f32 0.35355338, %v1294_v63  ;;  %v1935_v1 = vpop.f32.mrb[15].mxu1 }
 0x894   :  { %v1303_v2 = vsel %vm150_vm2, %v1299_v0, -inf }
 0x895   :  { %1304 = vmax.xlane.f32.xlu1 %v1303_v2 }
 0x8a6   :  { %1322 = vrot.lane.b32.xlu1 %v2236_v12, %s2147_s16 }
 0x8aa   :  { %1476 = vrot.lane.b32.xlu1 %v2314_v19, %s2133_s8 }
 0x8ae   :  { %1478 = vrot.lane.b32.xlu1 %v2316_v21, %s2133_s8  ;;  %s2149_s8 = smov 24  }
 0x8b2   :  { %1486 = vrot.lane.b32.xlu1 %v1138_v57, %s2148_s17 }
 0x91e   :  { %v1302_v8 = vpop.xlane.xlu0 %1301 }
 0x91f   :  { %v1306_v3 = vsub.f32 %v1298_v59, %v1302_v8 }
 0x921   :  { %v1308_v4 = vmul.f32 1.442695, %v1306_v3 }
 0x922   :  { %v1305_v5 = vpop.xlane.xlu1 %1304 }
 0x923   :  { %2039 = vpow2.f32 %v1308_v4  ;;  %v1307_v6 = vsub.f32 %v1299_v0, %v1305_v5 }
 0x925   :  { %v1310_v7 = vmul.f32 1.442695, %v1307_v6 }
 0x926   :  { %v1323_v9 = vpop.permute.xlu1 %1322 }
 0x927   :  { %2041 = vpow2.f32 %v1310_v7  ;;  %1937 = vmatpush3.msra.mxu0 %v1323_v9 }
 0x928   :  { %1977 = vmatprep.subr.bf16.mxu0 %v1976_v24 }
 0x92a   :  { %v1477_v31 = vpop.permute.xlu1 %1476 }
 0x92b   :  { %v1498_v34 = vsel %vm150_vm2, %v2282_v46, %v1477_v31  ;;  %v1600_v46 = vld [vmem:[%s2412_s5] sm:$0xff]  ;;  %s1763_s5 = sshll.u32 %s2151_s4, 4  ;;  %s1764_s5 = int_to_ptr.vmem [resolvable:$true] %s1763_s5 }
 0x92c   :  { %s2103_s27 = scalar_lea.vmem %s1764_s5, 32  ;;  %p2108_p3 = scmp.lt.s32.totalorder %s1764_s5, %s1764_s5 }
 0x92d   :  { %v2040_v10 = vpop.eup %2039  ;;  %p2104_p2 = scmp.ne.s32.totalorder %s1764_s5, %s2103_s27  ;;  %p2109_p4 = scmp.lt.s32.totalorder %s2103_s27, %s2103_s27 }
 0x92e   :  { %v1312_v12 = vsel %vm150_vm2, %v2040_v10, 0.0  ;;  %v1479_v32 = vpop.permute.xlu1 %1478 }
 0x92f   :  { %1313 = vadd.xlane.f32.xlu0 %v1312_v12  ;;  %v1499_v39 = vsel %vm150_vm2, %v2284_v48, %v1479_v32  ;;  %v1984_v48 = vpack.c.bf16 %v1601_v43, %v1600_v46  ;;  %p2110_p5 = por %p2109_p4, %p2108_p3 }
 0x931   :  { %v2042_v11 = vpop.eup %2041  ;;  %p2111_p6 = pnand %p2110_p5, %p2104_p2 }
 0x932   :  { %v1315_v14 = vsel %vm150_vm2, %v2042_v11, 0.0  ;;  %v1487_v35 = vpop.permute.xlu1 %1486 }
 0x933   :  { %1316 = vadd.xlane.f32.xlu0 %v1315_v14  ;;  %v1502_v40 = vsel %vm1500_vm4, %v1499_v39, %v1487_v35 }
 0x949   :  { %1398 = vrot.lane.b32.xlu0 %v2239_v13, %s2147_s16  ;;  %v1508_v13 = vld [vmem:[#allocation5 + $0x10] sm:$0xff] }
 0x94a   :  { %v1980_v26 = vpack.c.bf16 %v1509_v25, %v1508_v13 }
 0x94d   :  { %1484 = vrot.lane.b32.xlu0 %v1062_v55, %s2148_s17 }
 0x9bc   :  { %v1314_v15 = vpop.xlane.xlu0 %1313 }
 0x9bd   :  { %2043 = vrcp.f32 %v1314_v15 }
 0x9c0   :  { %v1317_v16 = vpop.xlane.xlu0 %1316 }
 0x9c1   :  { %2045 = vrcp.f32 %v1317_v16 }
 0x9c4   :  { %v1399_v17 = vpop.permute.xlu0 %1398 }
 0x9c5   :  { %1942 = vmatpush3.msra.mxu1 %v1399_v17 }
 0x9c6   :  { %1985 = vmatprep.subr.bf16.mxu1 %v1984_v48 }
 0x9c7   :  { %v2044_v18 = vpop.eup %2043 }
 0x9c8   :  { %v1320_v19 = vmul.f32 %v2044_v18, %v2040_v10  ;;  %v1485_v33 = vpop.permute.xlu0 %1484 }
 0x9c9   :  { %v1501_v36 = vsel %vm1500_vm4, %v1498_v34, %v1485_v33 }
 0x9ca   :  { %1939 = vmatmul.mubr.msk.f32.vlgmr.msra.gmra.mrb[14].mxu0 %vm150_vm2, %v1320_v19 }
 0x9cb   :  { %v2046_v20 = vpop.eup %2045  ;;  %1979 = vmatpush3.bf16.msra.mxu0 %v1976_v24 }
 0x9cc   :  { %v1321_v21 = vmul.f32 %v2046_v20, %v2042_v11  ;;  %1981 = vmatprep.subr.bf16.mxu0 %v1980_v26 }
 0x9ce   :  { %1944 = vmatmul.mubr.msk.f32.vlgmr.msra.gmra.mrb[16].mxu1 %vm150_vm2, %v1321_v21 }
 0x9cf   :  { %1983 = vmatpush3.bf16.msra.mxu0 %v1980_v26  ;;  %1987 = vmatpush3.bf16.msra.mxu1 %v1984_v48 }
 0x9d0   :  { %1989 = vmatprep.subr.bf16.mxu1 %v1988_v47 }
 0x9d3   :  { %1991 = vmatpush3.bf16.msra.mxu1 %v1988_v47 }
 0xa9d   :  { %v1394_v27 = vpop.f32.mrb[14].mxu0 }
 0xa9e   :  { %1492 = vrot.lane.b32.xlu0 %v1394_v27, %s2149_s8  ;;  %v1940_v28 = vpop.f32.mrb[15].mxu0 }
 0xaa1   :  { %v1470_v29 = vpop.f32.mrb[16].mxu1 }
 0xaa2   :  { %1494 = vrot.lane.b32.xlu1 %v1470_v29, %s2149_s8  ;;  %v1945_v30 = vpop.f32.mrb[17].mxu1 }
 0xb10   :  { %v1493_v37 = vpop.permute.xlu0 %1492 }
 0xb11   :  { %v2360_v38 = vsel %vm1503_vm3, %v1501_v36, %v1493_v37 }
 0xb12   :  { %1954 = vmatprep.mubr.msk.f32.mxu0 %vm65_vm0, %v2360_v38 }
 0xb14   :  { %v1495_v41 = vpop.permute.xlu1 %1494 }
 0xb15   :  { %v2366_v42 = vsel %vm1503_vm3, %v1502_v40, %v1495_v41 }
 0xb16   :  { %1955 = vmatmul.mubr.msk.f32.vlgmr.msra.gmra.mrb[16].mxu0 %vm65_vm0, %v2366_v42 }
 0xbe9   :  { %v1956_v50 = vpop.f32.mrb[16].mxu0 }
 0xbea   :  { %v1595_v51 = vadd.f32 %v1956_v50, %v1800_v49  ;;  %v1589_v52 = vpop.f32.mrb[17].mxu0 }
 0xbeb   :  { %v1590_v53 = vadd.f32 %v1800_v49, %v1589_v52 }
 0xbed   :  { %2047 = vtanh.f32 %v1590_v53 }
 0xbee   :  { %2049 = vtanh.f32 %v1595_v51 }
 0xbf7   :  { %v2048_v54 = vpop.eup %2047 }
 0xbf8   :  { %v2050_v55 = vpop.eup %2049  ;;  %1965 = vmatprep.mubr.msk.f32.mxu1 %vm65_vm0, %v2048_v54 }
 0xbf9   :  { %1966 = vmatmul.mubr.msk.f32.vlgmr.msra.gmra.mrb[18].mxu1 %vm65_vm0, %v2050_v55 }
 0xccc   :  { %v1967_v57 = vpop.f32.mrb[18].mxu1 }
 0xccd   :  { %v1693_v58 = vsel %vm1685_vm5, %v1967_v57, -inf  ;;  %v1676_v59 = vpop.f32.mrb[19].mxu1 }
 0xcce   :  { %v1694_v60 = vrot.slane %v1693_v58, 4  ;;  %v1686_v61 = vsel %vm1685_vm5, %v1676_v59, -inf }
 0xccf   :  { %v1687_v62 = vrot.slane %v1686_v61, 4 }
 0xcd0   :  { %v1695_v63 = vmax.f32 %v1693_v58, %v1694_v60 }
 0xcd1   :  { %v1688_v0 = vmax.f32 %v1686_v61, %v1687_v62 }
 0xcd2   :  { %v1696_v1 = vrot.slane %v1695_v63, 2 }
 0xcd3   :  { %v1689_v2 = vrot.slane %v1688_v0, 2 }
 0xcd4   :  { %v1697_v8 = vmax.f32 %v1695_v63, %v1696_v1 }
 0xcd5   :  { %v1690_v3 = vmax.f32 %v1688_v0, %v1689_v2 }
 0xcd6   :  { %v1698_v4 = vrot.slane %v1697_v8, 1 }
 0xcd7   :  { %v1691_v5 = vrot.slane %v1690_v3, 1 }
 0xcd8   :  { %v1699_v6 = vmax.f32 %v1697_v8, %v1698_v4 }
 0xcd9   :  { %v1692_v7 = vmax.f32 %v1690_v3, %v1691_v5 }
 0xcda   :  { %v1701_v9 = vsub.f32 %v1967_v57, %v1699_v6 }
 0xcdb   :  { %v1700_v10 = vsub.f32 %v1676_v59, %v1692_v7 }
 0xcdc   :  { %v1704_v12 = vmul.f32 1.442695, %v1701_v9 }
 0xcdd   :  { %v1702_v11 = vmul.f32 1.442695, %v1700_v10 }
 0xcde   :  { %2051 = vpow2.f32 %v1704_v12 }
 0xcdf   :  { %2053 = vpow2.f32 %v1702_v11 }
 0xce8   :  { %v2052_v14 = vpop.eup %2051 }
 0xce9   :  { %v2054_v15 = vpop.eup %2053  ;;  %v1713_v16 = vsel %vm1685_vm5, %v2052_v14, 0.0 }
 0xcea   :  { %v1714_v17 = vrot.slane %v1713_v16, 4  ;;  %v1706_v18 = vsel %vm1685_vm5, %v2054_v15, 0.0 }
 0xceb   :  { %v1707_v19 = vrot.slane %v1706_v18, 4 }
 0xcec   :  { %v1715_v20 = vadd.f32 %v1714_v17, %v1713_v16 }
 0xced   :  { %v1708_v21 = vadd.f32 %v1707_v19, %v1706_v18 }
 0xcee   :  { %v1716_v22 = vrot.slane %v1715_v20, 2 }
 0xcef   :  { %v1709_v23 = vrot.slane %v1708_v21, 2 }
 0xcf0   :  { %v1717_v24 = vadd.f32 %v1716_v22, %v1715_v20 }
 0xcf1   :  { %v1710_v13 = vadd.f32 %v1709_v23, %v1708_v21 }
 0xcf2   :  { %v1718_v25 = vrot.slane %v1717_v24, 1 }
 0xcf3   :  { %v1711_v26 = vrot.slane %v1710_v13, 1 }
 0xcf4   :  { %v1719_v27 = vadd.f32 %v1718_v25, %v1717_v24 }
 0xcf5   :  { %v1712_v28 = vadd.f32 %v1711_v26, %v1710_v13 }
 0xcf6   :  { %2055 = vrcp.f32 %v1719_v27 }
 0xcf7   :  { %2057 = vrcp.f32 %v1712_v28 }
 0xd00   :  { %v2056_v29 = vpop.eup %2055 }
 0xd01   :  { %v2058_v30 = vpop.eup %2057  ;;  %v1723_v31 = vmul.f32 %v2056_v29, %v2052_v14 }
 0xd02   :  { %v1722_v32 = vmul.f32 %v2058_v30, %v2054_v15 }
 0xd03   :  { %1731 = vperm.xlu1 %2014, %v1723_v31  }
 0xd04   :  { %1726 = vperm.xlu0 %2013, %v1722_v32  }
 0xd82   :  { %v1732_v33 = vpop.permute.xlu1 %1731 }
 0xd83   :  { %v1735_v34 = vmul.f32 %v1732_v33, %v2366_v42  ;;  %v1727_v35 = vpop.permute.xlu0 %1726 }
 0xd84   :  { %v1734_v36 = vmul.f32 %v1727_v35, %v2360_v38 }
 0xd85   :  { %v1743_v37 = vsel %vm65_vm0, %v1735_v34, 0.0 }
 0xd86   :  { %v1744_v39 = vrot.slane %v1743_v37, 4  ;;  %v1736_v40 = vsel %vm65_vm0, %v1734_v36, 0.0 }
 0xd87   :  { %v1737_v41 = vrot.slane %v1736_v40, 4 }
 0xd88   :  { %v1745_v46 = vadd.f32 %v1744_v39, %v1743_v37 }
 0xd89   :  { %v1738_v43 = vadd.f32 %v1737_v41, %v1736_v40 }
 0xd8a   :  { %v1746_v44 = vrot.slane %v1745_v46, 2 }
 0xd8b   :  { %v1739_v48 = vrot.slane %v1738_v43, 2 }
 0xd8c   :  { %v1747_v45 = vadd.f32 %v1746_v44, %v1745_v46 }
 0xd8d   :  { %v1740_v47 = vadd.f32 %v1739_v48, %v1738_v43 }
 0xd8e   :  { %v1748_v49 = vrot.slane %v1747_v45, 1 }
 0xd8f   :  { %v1741_v50 = vrot.slane %v1740_v47, 1 }
 0xd90   :  { %v1749_v42 = vadd.f32 %v1748_v49, %v1747_v45 }
 0xd91   :  { %v1742_v51 = vadd.f32 %v1741_v50, %v1740_v47 }
 0xd93   :  { %v1753_v38 = vsel %vm1752_vm6, %v1749_v42, %v1742_v51 }
 0xd94   :  { %1756 = vst.msk [vmem:[#allocation7] sm:$0x3] %vm1755_vm7, %v1753_v38 }
 0xd95   :  { %2114 = shalt.err (!%p2111_p6)
}
 0xd96   :  { %s2115_s1 = scalar_lea.hbm %s2413_s6, 32 }
 0xd97   :  { %p2116_p7 = scmp.ne.s32.totalorder %s2413_s6, %s2115_s1  ;;  %p2119_p8 = scmp.lt.u32.totalorder %s2115_s1, %s2413_s6 }
 0xd99   :  { %p2121_p9 = pnand %p2119_p8, %p2116_p7 }
 0xd9b   :  { %2124 = shalt.err (!%p2121_p9)
}
 0xd9c   :  { %1766 = dma.vmem_to_hbm [thread:$0]  %s1764_s5, 32, %s2413_s6, [#allocation4]  }
 0xd9d   :  { %2129 = dma.done.wait [#allocation4], 32  }
 0xd9e   :  { %2130 = vsyncadd [#allocation4], 4294967264 }
 0xd9f   :  { %1770 = vsyncpa [#allocation3], 1 }
 0xda0   :  { %1771 = vsyncpa [#allocation6], 1 }
 0xda1   :  { %1772 = vsyncpa [#allocation4], 1 }

</bundles_post_ra>
